<compile_context>
chip_gen: v7x
topology: tpu7x:2x2x1
jax: 0.10.0
libtpu: 0.0.40
codegen_flags: <defaults>
</compile_context>

<pallas_src>
import jax
import jax.numpy as jnp
from jax import lax
from jax.experimental import pallas as pl
from jax.experimental.pallas import tpu as pltpu


def _round_up(x, m):
    return ((x + m - 1) // m) * m


def _make_embedder_kernel(dropout_p, training, seed):
    apply_dropout = bool(training) and float(dropout_p) > 0.0
    keep_prob = 1.0 - float(dropout_p)

    def kernel(ids_ref, emb_ref, pe_ref, o_ref):
        # ids_ref: (B, S_pad) int32, SMEM (scalar-prefetched token ids)
        # emb_ref: (V, Dp)   f32,   VMEM-resident (constant index_map, single-buffered)
        # pe_ref:  (TS, Dp)  f32,   positional-encoding rows for this sequence tile
        # o_ref:   (TS, Dp)  out,   output tile (batch / seq-tile leading dims squeezed away)
        t = pl.program_id(0)
        b = pl.program_id(1)
        ts = o_ref.shape[0]
        v = emb_ref.shape[0]
        base = t * ts

        def row(i, carry):
            tok = ids_ref[b, base + i]
            # Clamp instead of reading OOB VMEM on a bad token id (PyTorch would raise here).
            tok = jnp.minimum(jnp.maximum(tok, 0), v - 1)
            o_ref[pl.ds(i, 1), :] = (
                emb_ref[pl.ds(tok, 1), :] + pe_ref[pl.ds(i, 1), :]
            ).astype(o_ref.dtype)
            return carry

        lax.fori_loop(0, ts, row, 0, unroll=8)

        if apply_dropout:
            # Inverted dropout matching nn.Dropout(p) in training mode (eval/p=0 is identity).
            pltpu.prng_seed(seed + t * pl.num_programs(1) + b)
            bits = pltpu.bitcast(pltpu.prng_random_bits(o_ref.shape), jnp.uint32)
            thresh = jnp.uint32(min(int(keep_prob * 2.0 ** 32), 2 ** 32 - 1))
            keep = bits < thresh
            o_ref[...] = jnp.where(keep, o_ref[...] * (1.0 / keep_prob), 0.0).astype(o_ref.dtype)

    return kernel


def embedder_forward(token_ids, emb_table, pe_table, *, dropout_p=0.0, training=False,
                     seed=0, seq_tile=None, out_dtype=jnp.float32):
    """token_ids [B,S] int; emb_table [V,D] f32; pe_table [max_len,D] f32 -> [B,S,D] out_dtype.

    Set out_dtype=jnp.bfloat16 to halve the dominant HBM write traffic if the consumer allows.
    """
    B, S = token_ids.shape
    V, D = emb_table.shape
    assert pe_table.shape[0] >= S, "sequence longer than position-encoder max_len"

    # Generation-aware VMEM capacity (v5e/v6e: 128 MiB; v7x: 64 MiB per TensorCore).
    try:
        vmem_cap = int(pltpu.get_tpu_info().vmem_capacity_bytes)
    except Exception:  # conservative fallback = v7x per-core size
        vmem_cap = 64 * 2 ** 20

    if seq_tile is None:
        # Bigger tiles amortize the ~0.35us/step overhead; keep 256 on small-VMEM (v7x) chips.
        seq_tile = 512 if vmem_cap > 64 * 2 ** 20 else 256

    # Lane-dense model dim (multiple of 128) -> unmasked vst on the output store.
    Dp = _round_up(D, 128)
    TS = min(seq_tile, _round_up(S, 8))
    S_pad = _round_up(S, TS)
    T = S_pad // TS  # on v7x, grid (T, B) should have >= 2 steps so both TCs are busy

    ids = token_ids.astype(jnp.int32)
    if S_pad != S:
        ids = jnp.pad(ids, ((0, 0), (0, S_pad - S)))
    pe = jnp.pad(pe_table[:S].astype(jnp.float32), ((0, S_pad - S), (0, Dp - D)))
    emb = jnp.pad(emb_table.astype(jnp.float32), ((0, 0), (0, Dp - D)))

    out_itemsize = jnp.dtype(out_dtype).itemsize
    table_bytes = V * Dp * 4                                     # single-buffered (Buffered(1))
    tile_bytes = 2 * TS * Dp * 4 + 2 * TS * Dp * out_itemsize    # PE + output double buffers
    need_bytes = table_bytes + tile_bytes
    assert need_bytes <= int(0.6 * vmem_cap), (
        f"embedding table (~{table_bytes >> 20} MiB) too large to stay VMEM-resident on this "
        "chip generation")
    # TODO(synk): large-vocab path (table left in HBM via memory_space=pl.ANY + manual
    # double-buffered per-row pltpu.make_async_copy gather) for tables above the VMEM budget.

    vmem_limit = int(min(int(0.9 * vmem_cap), max(32 * 2 ** 20, need_bytes + 16 * 2 ** 20)))

    cost = pl.CostEstimate(
        flops=B * S_pad * Dp,                                    # the PE add
        transcendentals=0,
        bytes_accessed=(B * S_pad * 4                            # token ids
                        + V * Dp * 4                             # table, read once (resident)
                        + S_pad * Dp * 4                         # PE, read once ((T, B) order)
                        + B * S_pad * Dp * out_itemsize),        # output writes (dominant)
    )

    kernel = _make_embedder_kernel(dropout_p, training, seed)

    out = pl.pallas_call(
        kernel,
        out_shape=jax.ShapeDtypeStruct((B, S_pad, Dp), out_dtype),
        grid_spec=pltpu.PrefetchScalarGridSpec(
            num_scalar_prefetch=1,                               # token ids land in SMEM
            grid=(T, B),                                         # batch innermost: PE tile reused
            in_specs=[
                # Embedding table: constant block index -> DMA'd once; single-buffered since the
                # block never changes (double-buffering it would only waste VMEM).
                pl.BlockSpec((V, Dp), lambda t, b, ids: (0, 0),
                             pipeline_mode=pl.Buffered(1)),
                # Positional encoding: one (TS, Dp) block per sequence tile, reused across batch.
                pl.BlockSpec((TS, Dp), lambda t, b, ids: (t, 0)),
            ],
            out_specs=pl.BlockSpec((None, TS, Dp), lambda t, b, ids: (b, t, 0)),
        ),
        compiler_params=pltpu.CompilerParams(
            dimension_semantics=("parallel", "parallel"),
            vmem_limit_bytes=vmem_limit),
        cost_estimate=cost,
    )(ids, emb, pe)

    return out[:, :S, :D]


def make_position_encoding(model_dim, max_len):
    """Matches PositionEncoder.__init__ buffer `pe` exactly (float32)."""
    MAX_PERIOD = 10000.0
    half = model_dim // 2
    c = jnp.exp(jnp.linspace(0.0, jnp.log(MAX_PERIOD), half))          # [D/2]
    position = jnp.arange(0, max_len, dtype=jnp.float32)               # [L]
    angles = position[:, None] * c[None, :]                            # [L, D/2]
    encoding = jnp.zeros((max_len, model_dim), dtype=jnp.float32)
    encoding = encoding.at[:, 0::2].set(jnp.sin(angles))
    encoding = encoding.at[:, 1::2].set(jnp.cos(angles))
    return encoding


if __name__ == "__main__":
    # Small shapes consistent with the module.
    num_tokens = 32   # vocab size
    model_dim = 32
    max_len = 16
    batch, seq = 2, 8
    dropout = 0.0     # nn.Dropout is identity in eval / p=0

    key = jax.random.PRNGKey(0)
    k_emb, k_ids = jax.random.split(key)

    # nn.Embedding default init: N(0, 1)
    emb_table = jax.random.normal(k_emb, (num_tokens, model_dim), dtype=jnp.float32)
    pe_table = make_position_encoding(model_dim, max_len)
    token_ids = jax.random.randint(k_ids, (batch, seq), 0, num_tokens, dtype=jnp.int32)

    out = embedder_forward(token_ids, emb_table, pe_table, dropout_p=dropout, training=False)
    out = jax.block_until_ready(out)

    # Pure-JAX reference: embedding lookup + positional encoding add (dropout = identity).
    ref = emb_table[token_ids] + pe_table[None, :seq, :]
    assert out.shape == (batch, seq, model_dim), out.shape
    assert out.dtype == jnp.float32, out.dtype
    assert jnp.allclose(out, ref, atol=1e-5, rtol=1e-5), "mismatch vs reference"

    print("KERNEL_OK")
</pallas_src>

<mosaic_0001>
module attributes {stable_mosaic.version = 11 : i64} {
  func.func @kernel(%arg0: i32, %arg1: i32, %arg2: memref<2x8xi32, #tpu.memory_space<smem>>, %arg3: memref<32x128xf32, #tpu.memory_space<vmem>>, %arg4: memref<8x128xf32, #tpu.memory_space<vmem>>, %arg5: memref<1x8x128xf32, #tpu.memory_space<vmem>>) attributes {dimension_semantics = [#tpu.dimension_semantics<parallel>, #tpu.dimension_semantics<parallel>], iteration_bounds = array<i64: 1, 2>, scalar_prefetch = 1 : i64, scratch_operands = 0 : i64, tpu.core_type = #tpu.core_type<tc>, window_params = [{pipeline_mode = #tpu.pipeline_mode<synchronous>, transform_indices = @transform_0, window_bounds = array<i64: 32, 128>}, {transform_indices = @transform_1, window_bounds = array<i64: 8, 128>}, {transform_indices = @transform_2, window_bounds = array<i64: 1, 8, 128>}]} {
    %c8_i32 = arith.constant 8 : i32
    %0 = arith.muli %arg0, %c8_i32 : i32
    %c0_i32 = arith.constant 0 : i32
    %1 = arith.addi %0, %c0_i32 : i32
    %2 = arith.index_cast %arg1 : i32 to index
    %3 = arith.index_cast %1 : i32 to index
    %4 = memref.load %arg2[%2, %3] : memref<2x8xi32, #tpu.memory_space<smem>>
    %c0_i32_0 = arith.constant 0 : i32
    %5 = arith.maxsi %4, %c0_i32_0 : i32
    %c31_i32 = arith.constant 31 : i32
    %6 = arith.minsi %5, %c31_i32 : i32
    %7 = arith.index_cast %6 : i32 to index
    %c0 = arith.constant 0 : index
    %8 = vector.load %arg3[%7, %c0] : memref<32x128xf32, #tpu.memory_space<vmem>>, vector<1x128xf32>
    %9 = arith.index_cast %c0_i32 : i32 to index
    %c0_1 = arith.constant 0 : index
    %10 = vector.load %arg4[%9, %c0_1] : memref<8x128xf32, #tpu.memory_space<vmem>>, vector<1x128xf32>
    %11 = arith.addf %8, %10 : vector<1x128xf32>
    %c0_2 = arith.constant 0 : index
    %12 = arith.index_cast %c0_i32 : i32 to index
    %c0_3 = arith.constant 0 : index
    %13 = vector.load %arg5[%c0_2, %12, %c0_3] : memref<1x8x128xf32, #tpu.memory_space<vmem>>, vector<1x1x128xf32>
    %14 = vector.shape_cast %13 : vector<1x1x128xf32> to vector<1x128xf32>
    %15 = vector.shape_cast %11 : vector<1x128xf32> to vector<1x1x128xf32>
    tpu.vector_store %arg5[%c0_2, %12, %c0_3], %15 {strides = array<i32>} : memref<1x8x128xf32, #tpu.memory_space<vmem>>, vector<1x1x128xf32>,
    %c1_i32 = arith.constant 1 : i32
    %16 = arith.addi %0, %c1_i32 : i32
    %17 = arith.index_cast %arg1 : i32 to index
    %18 = arith.index_cast %16 : i32 to index
    %19 = memref.load %arg2[%17, %18] : memref<2x8xi32, #tpu.memory_space<smem>>
    %c0_i32_4 = arith.constant 0 : i32
    %20 = arith.maxsi %19, %c0_i32_4 : i32
    %c31_i32_5 = arith.constant 31 : i32
    %21 = arith.minsi %20, %c31_i32_5 : i32
    %22 = arith.index_cast %21 : i32 to index
    %c0_6 = arith.constant 0 : index
    %23 = vector.load %arg3[%22, %c0_6] : memref<32x128xf32, #tpu.memory_space<vmem>>, vector<1x128xf32>
    %24 = arith.index_cast %c1_i32 : i32 to index
    %c0_7 = arith.constant 0 : index
    %25 = vector.load %arg4[%24, %c0_7] : memref<8x128xf32, #tpu.memory_space<vmem>>, vector<1x128xf32>
    %26 = arith.addf %23, %25 : vector<1x128xf32>
    %c0_8 = arith.constant 0 : index
    %27 = arith.index_cast %c1_i32 : i32 to index
    %c0_9 = arith.constant 0 : index
    %28 = vector.load %arg5[%c0_8, %27, %c0_9] : memref<1x8x128xf32, #tpu.memory_space<vmem>>, vector<1x1x128xf32>
    %29 = vector.shape_cast %28 : vector<1x1x128xf32> to vector<1x128xf32>
    %30 = vector.shape_cast %26 : vector<1x128xf32> to vector<1x1x128xf32>
    tpu.vector_store %arg5[%c0_8, %27, %c0_9], %30 {strides = array<i32>} : memref<1x8x128xf32, #tpu.memory_space<vmem>>, vector<1x1x128xf32>,
    %c2_i32 = arith.constant 2 : i32
    %31 = arith.addi %0, %c2_i32 : i32
    %32 = arith.index_cast %arg1 : i32 to index
    %33 = arith.index_cast %31 : i32 to index
    %34 = memref.load %arg2[%32, %33] : memref<2x8xi32, #tpu.memory_space<smem>>
    %c0_i32_10 = arith.constant 0 : i32
    %35 = arith.maxsi %34, %c0_i32_10 : i32
    %c31_i32_11 = arith.constant 31 : i32
    %36 = arith.minsi %35, %c31_i32_11 : i32
    %37 = arith.index_cast %36 : i32 to index
    %c0_12 = arith.constant 0 : index
    %38 = vector.load %arg3[%37, %c0_12] : memref<32x128xf32, #tpu.memory_space<vmem>>, vector<1x128xf32>
    %39 = arith.index_cast %c2_i32 : i32 to index
    %c0_13 = arith.constant 0 : index
    %40 = vector.load %arg4[%39, %c0_13] : memref<8x128xf32, #tpu.memory_space<vmem>>, vector<1x128xf32>
    %41 = arith.addf %38, %40 : vector<1x128xf32>
    %c0_14 = arith.constant 0 : index
    %42 = arith.index_cast %c2_i32 : i32 to index
    %c0_15 = arith.constant 0 : index
    %43 = vector.load %arg5[%c0_14, %42, %c0_15] : memref<1x8x128xf32, #tpu.memory_space<vmem>>, vector<1x1x128xf32>
    %44 = vector.shape_cast %43 : vector<1x1x128xf32> to vector<1x128xf32>
    %45 = vector.shape_cast %41 : vector<1x128xf32> to vector<1x1x128xf32>
    tpu.vector_store %arg5[%c0_14, %42, %c0_15], %45 {strides = array<i32>} : memref<1x8x128xf32, #tpu.memory_space<vmem>>, vector<1x1x128xf32>,
    %c3_i32 = arith.constant 3 : i32
    %46 = arith.addi %0, %c3_i32 : i32
    %47 = arith.index_cast %arg1 : i32 to index
    %48 = arith.index_cast %46 : i32 to index
    %49 = memref.load %arg2[%47, %48] : memref<2x8xi32, #tpu.memory_space<smem>>
    %c0_i32_16 = arith.constant 0 : i32
    %50 = arith.maxsi %49, %c0_i32_16 : i32
    %c31_i32_17 = arith.constant 31 : i32
    %51 = arith.minsi %50, %c31_i32_17 : i32
    %52 = arith.index_cast %51 : i32 to index
    %c0_18 = arith.constant 0 : index
    %53 = vector.load %arg3[%52, %c0_18] : memref<32x128xf32, #tpu.memory_space<vmem>>, vector<1x128xf32>
    %54 = arith.index_cast %c3_i32 : i32 to index
    %c0_19 = arith.constant 0 : index
    %55 = vector.load %arg4[%54, %c0_19] : memref<8x128xf32, #tpu.memory_space<vmem>>, vector<1x128xf32>
    %56 = arith.addf %53, %55 : vector<1x128xf32>
    %c0_20 = arith.constant 0 : index
    %57 = arith.index_cast %c3_i32 : i32 to index
    %c0_21 = arith.constant 0 : index
    %58 = vector.load %arg5[%c0_20, %57, %c0_21] : memref<1x8x128xf32, #tpu.memory_space<vmem>>, vector<1x1x128xf32>
    %59 = vector.shape_cast %58 : vector<1x1x128xf32> to vector<1x128xf32>
    %60 = vector.shape_cast %56 : vector<1x128xf32> to vector<1x1x128xf32>
    tpu.vector_store %arg5[%c0_20, %57, %c0_21], %60 {strides = array<i32>} : memref<1x8x128xf32, #tpu.memory_space<vmem>>, vector<1x1x128xf32>,
    %c4_i32 = arith.constant 4 : i32
    %61 = arith.addi %0, %c4_i32 : i32
    %62 = arith.index_cast %arg1 : i32 to index
    %63 = arith.index_cast %61 : i32 to index
    %64 = memref.load %arg2[%62, %63] : memref<2x8xi32, #tpu.memory_space<smem>>
    %c0_i32_22 = arith.constant 0 : i32
    %65 = arith.maxsi %64, %c0_i32_22 : i32
    %c31_i32_23 = arith.constant 31 : i32
    %66 = arith.minsi %65, %c31_i32_23 : i32
    %67 = arith.index_cast %66 : i32 to index
    %c0_24 = arith.constant 0 : index
    %68 = vector.load %arg3[%67, %c0_24] : memref<32x128xf32, #tpu.memory_space<vmem>>, vector<1x128xf32>
    %69 = arith.index_cast %c4_i32 : i32 to index
    %c0_25 = arith.constant 0 : index
    %70 = vector.load %arg4[%69, %c0_25] : memref<8x128xf32, #tpu.memory_space<vmem>>, vector<1x128xf32>
    %71 = arith.addf %68, %70 : vector<1x128xf32>
    %c0_26 = arith.constant 0 : index
    %72 = arith.index_cast %c4_i32 : i32 to index
    %c0_27 = arith.constant 0 : index
    %73 = vector.load %arg5[%c0_26, %72, %c0_27] : memref<1x8x128xf32, #tpu.memory_space<vmem>>, vector<1x1x128xf32>
    %74 = vector.shape_cast %73 : vector<1x1x128xf32> to vector<1x128xf32>
    %75 = vector.shape_cast %71 : vector<1x128xf32> to vector<1x1x128xf32>
    tpu.vector_store %arg5[%c0_26, %72, %c0_27], %75 {strides = array<i32>} : memref<1x8x128xf32, #tpu.memory_space<vmem>>, vector<1x1x128xf32>,
    %c5_i32 = arith.constant 5 : i32
    %76 = arith.addi %0, %c5_i32 : i32
    %77 = arith.index_cast %arg1 : i32 to index
    %78 = arith.index_cast %76 : i32 to index
    %79 = memref.load %arg2[%77, %78] : memref<2x8xi32, #tpu.memory_space<smem>>
    %c0_i32_28 = arith.constant 0 : i32
    %80 = arith.maxsi %79, %c0_i32_28 : i32
    %c31_i32_29 = arith.constant 31 : i32
    %81 = arith.minsi %80, %c31_i32_29 : i32
    %82 = arith.index_cast %81 : i32 to index
    %c0_30 = arith.constant 0 : index
    %83 = vector.load %arg3[%82, %c0_30] : memref<32x128xf32, #tpu.memory_space<vmem>>, vector<1x128xf32>
    %84 = arith.index_cast %c5_i32 : i32 to index
    %c0_31 = arith.constant 0 : index
    %85 = vector.load %arg4[%84, %c0_31] : memref<8x128xf32, #tpu.memory_space<vmem>>, vector<1x128xf32>
    %86 = arith.addf %83, %85 : vector<1x128xf32>
    %c0_32 = arith.constant 0 : index
    %87 = arith.index_cast %c5_i32 : i32 to index
    %c0_33 = arith.constant 0 : index
    %88 = vector.load %arg5[%c0_32, %87, %c0_33] : memref<1x8x128xf32, #tpu.memory_space<vmem>>, vector<1x1x128xf32>
    %89 = vector.shape_cast %88 : vector<1x1x128xf32> to vector<1x128xf32>
    %90 = vector.shape_cast %86 : vector<1x128xf32> to vector<1x1x128xf32>
    tpu.vector_store %arg5[%c0_32, %87, %c0_33], %90 {strides = array<i32>} : memref<1x8x128xf32, #tpu.memory_space<vmem>>, vector<1x1x128xf32>,
    %c6_i32 = arith.constant 6 : i32
    %91 = arith.addi %0, %c6_i32 : i32
    %92 = arith.index_cast %arg1 : i32 to index
    %93 = arith.index_cast %91 : i32 to index
    %94 = memref.load %arg2[%92, %93] : memref<2x8xi32, #tpu.memory_space<smem>>
    %c0_i32_34 = arith.constant 0 : i32
    %95 = arith.maxsi %94, %c0_i32_34 : i32
    %c31_i32_35 = arith.constant 31 : i32
    %96 = arith.minsi %95, %c31_i32_35 : i32
    %97 = arith.index_cast %96 : i32 to index
    %c0_36 = arith.constant 0 : index
    %98 = vector.load %arg3[%97, %c0_36] : memref<32x128xf32, #tpu.memory_space<vmem>>, vector<1x128xf32>
    %99 = arith.index_cast %c6_i32 : i32 to index
    %c0_37 = arith.constant 0 : index
    %100 = vector.load %arg4[%99, %c0_37] : memref<8x128xf32, #tpu.memory_space<vmem>>, vector<1x128xf32>
    %101 = arith.addf %98, %100 : vector<1x128xf32>
    %c0_38 = arith.constant 0 : index
    %102 = arith.index_cast %c6_i32 : i32 to index
    %c0_39 = arith.constant 0 : index
    %103 = vector.load %arg5[%c0_38, %102, %c0_39] : memref<1x8x128xf32, #tpu.memory_space<vmem>>, vector<1x1x128xf32>
    %104 = vector.shape_cast %103 : vector<1x1x128xf32> to vector<1x128xf32>
    %105 = vector.shape_cast %101 : vector<1x128xf32> to vector<1x1x128xf32>
    tpu.vector_store %arg5[%c0_38, %102, %c0_39], %105 {strides = array<i32>} : memref<1x8x128xf32, #tpu.memory_space<vmem>>, vector<1x1x128xf32>,
    %c7_i32 = arith.constant 7 : i32
    %106 = arith.addi %0, %c7_i32 : i32
    %107 = arith.index_cast %arg1 : i32 to index
    %108 = arith.index_cast %106 : i32 to index
    %109 = memref.load %arg2[%107, %108] : memref<2x8xi32, #tpu.memory_space<smem>>
    %c0_i32_40 = arith.constant 0 : i32
    %110 = arith.maxsi %109, %c0_i32_40 : i32
    %c31_i32_41 = arith.constant 31 : i32
    %111 = arith.minsi %110, %c31_i32_41 : i32
    %112 = arith.index_cast %111 : i32 to index
    %c0_42 = arith.constant 0 : index
    %113 = vector.load %arg3[%112, %c0_42] : memref<32x128xf32, #tpu.memory_space<vmem>>, vector<1x128xf32>
    %114 = arith.index_cast %c7_i32 : i32 to index
    %c0_43 = arith.constant 0 : index
    %115 = vector.load %arg4[%114, %c0_43] : memref<8x128xf32, #tpu.memory_space<vmem>>, vector<1x128xf32>
    %116 = arith.addf %113, %115 : vector<1x128xf32>
    %c0_44 = arith.constant 0 : index
    %117 = arith.index_cast %c7_i32 : i32 to index
    %c0_45 = arith.constant 0 : index
    %118 = vector.load %arg5[%c0_44, %117, %c0_45] : memref<1x8x128xf32, #tpu.memory_space<vmem>>, vector<1x1x128xf32>
    %119 = vector.shape_cast %118 : vector<1x1x128xf32> to vector<1x128xf32>
    %120 = vector.shape_cast %116 : vector<1x128xf32> to vector<1x1x128xf32>
    tpu.vector_store %arg5[%c0_44, %117, %c0_45], %120 {strides = array<i32>} : memref<1x8x128xf32, #tpu.memory_space<vmem>>, vector<1x1x128xf32>,
    %c8_i32_46 = arith.constant 8 : i32
    return
  }
  func.func @transform_0(%arg0: i32, %arg1: i32, %arg2: memref<2x8xi32, #tpu.memory_space<smem>>) -> (i32, i32) {
    %c0_i32 = arith.constant 0 : i32
    %c0_i32_0 = arith.constant 0 : i32
    %c0_i32_1 = arith.constant 0 : i32
    return %c0_i32, %c0_i32_0 : i32, i32
  }
  func.func @transform_1(%arg0: i32, %arg1: i32, %arg2: memref<2x8xi32, #tpu.memory_space<smem>>) -> (i32, i32) {
    %c0_i32 = arith.constant 0 : i32
    %c0_i32_0 = arith.constant 0 : i32
    return %arg0, %c0_i32 : i32, i32
  }
  func.func @transform_2(%arg0: i32, %arg1: i32, %arg2: memref<2x8xi32, #tpu.memory_space<smem>>) -> (i32, i32, i32) {
    %c0_i32 = arith.constant 0 : i32
    %c0_i32_0 = arith.constant 0 : i32
    return %arg1, %arg0, %c0_i32 : i32, i32, i32
  }
}

</mosaic_0001>

<bundles_post_ra>
// kernel: tpu_custom_call.1
= control target key start
LH: loop header
LB: loop body
LE: loop exit
PB: predicated region body
PF: predicated region fallthrough
CT: control target
= control target key end

     0   :  { %s991_s0 = inlined_call_operand.hbm [shape: s32[2,8], index: 0, kind: input, shape index: {}]   ;;  %s992_s1 = inlined_call_operand.hbm [shape: f32[32,128], index: 1, kind: input, shape index: {}]   ;;  %s993_s2 = inlined_call_operand.hbm [shape: f32[8,128], index: 2, kind: input, shape index: {}]   ;;  %s994_s3 = inlined_call_operand.hbm [shape: f32[2,8,128], index: 3, kind: output, shape index: {}]  }
   0x1   :  { %s579_s14 = scalar_lea.hbm %s991_s0, 32 }
   0x2   :  { %p580_p0 = scmp.ne.s32.totalorder %s991_s0, %s579_s14  ;;  %p583_p1 = scmp.lt.u32.totalorder %s579_s14, %s991_s0 }
   0x4   :  { %p585_p2 = pnand %p583_p1, %p580_p0 }
   0x6   :  { %588 = shalt.err (!%p585_p2)  }
   0x7   :  { %s735_s19 = smov [#allocation3]  }
   0x8   :  { %9 = dma.hbm_to_smem %s991_s0, 32, %s735_s19, [#allocation2] }
   0x9   :  { %697 = dma.done.wait [#allocation2], 32 }
   0xa   :  { %698 = vsyncadd [#allocation2], 4294967264 }
   0xb   :  { %11 = sfence }
   0xc   :  { %12 = vsyncpa [#allocation5], 0 }
   0xd   :  { %13 = vsyncpa [#allocation8], 0 }
   0xe   :  { %14 = vsyncpa [#allocation6], 0 }
   0xf   :  { %16 = vsyncpa [#allocation6 + $0x1], 0  ;;  %s773_s22 = smov 0   ;;  %s775_s23 = smov 0  }
  0x10   :  { %s777_s24 = smov 0   ;;  %s779_s25 = smov 0  }
  0x11   :  { %s781_s26 = smov 0   ;;  %s783_s27 = smov 0  }
  0x12 LB: > { %s423_s0 = sadd.s32 4294967295, %s733_s27   ;;  %s424_s28 = sadd.s32 4294967294, %s733_s27   ;;  %s733_s27 = sphi %s783_s27, %s22_s27   ;;  %s729_s26 = sphi %s781_s26, %s1012_s26   ;;  %s725_s25 = sphi %s779_s25, %s1011_s25   ;;  %s721_s24 = sphi %s777_s24, %s1010_s24   ;;  %s717_s23 = sphi %s775_s23, %s1009_s23   ;;  %s713_s22 = sphi %s773_s22, %s1008_s22  }
  0x13   : > { %s31_s29 = sadd.s32 1, %s729_s26  ;;  %s90_s30 = sadd.s32 1, %s721_s24 }
  0x14   : > { %p32_p3 = scmp.ge.s32.totalorder %s31_s29, 2  ;;  %p100_p4 = scmp.ne.s32.totalorder %s721_s24, %s717_s23 }
  0x15   : > { %p101_p5 = scmp.eq.s32.totalorder %s423_s0, 1  ;;  %p106_p6 = scmp.ne.s32.totalorder %s717_s23, %s713_s22 }
  0x16   : > { %s1014_s29 = smov (%p32_p3, %s31_s29), 0  ;;  %p107_p8 = scmp.eq.s32.totalorder %s424_s28, 1 }
  0x17   : > { %p813_p7 = por %p101_p5, %p100_p4  ;;  %s85_s5 = ssub.s32 %s729_s26, %s1014_s29 }
  0x18   : > { %p425_p9 = scmp.ge.s32.totalorder %s733_s27, 1  ;;  %p88_p10 = scmp.eq.s32.totalorder %s85_s5, 0 }
  0x19   : > { %s999_s4 = scalar_select %p813_p7, 1, 0 }
  0x1a   : > { %p820_p11 = por %p107_p8, %p106_p6  ;;  %p114_p12 = scmp.lt.s32.totalorder %s733_s27, 3 }
  0x1b   : > { %s826_s7 = scalar_select %p88_p10, %s721_s24, %s90_s30  }
  0x1c   : > { %s1000_s6 = scalar_select %p820_p11, 1, 0 }
  0x1d   : > { %p828_p13 = pnand %p425_p9, %p114_p12  ;;  %p832_p0 = scmp.eq.s32.totalorder %s423_s0, 0 }
  0x1e   : > { %s736_s10 = smov [#allocation4]   ;;  %s737_s13 = smov [#allocation7]  }
  0x1f   : > { %s1001_s8 = scalar_select %p828_p13, 1, 0 }
  0x20   : > { %s1002_s9 = scalar_select %p832_p0, 1, 0 }
  0x21   : > { %p510_p1 = pneg %p828_p13  ;;  %s126_s11 = sshll.u32 %s736_s10, 4  ;;  %s127_s11 = int_to_ptr.vmem [resolvable:$true] %s126_s11 }
  0x22   : > { %s142_s14 = sshll.u32 %s737_s13, 4  ;;  %s589_s17 = scalar_lea.hbm %s992_s1, 512  ;;  %s844_s14 = int_to_ptr.vmem [resolvable:$true] %s142_s14 }
  0x23   : > { %p840_p2 = pnand %p832_p0, %p510_p1  ;;  %p590_p3 = scmp.ne.s32.totalorder %s992_s1, %s589_s17 }
  0x24   : > { %p596_p8 = scmp.lt.u32.totalorder %s589_s17, %s992_s1 }
  0x25   : > { %p591_p4 = pneg %p840_p2 }
  0x27   : > { %p592_p5 = pnand %p591_p4, %p590_p3 }
  0x29   : > { %p593_p6 = pneg %p592_p5 }
  0x2b   : > { %p598_p9 = pnand %p596_p8, %p593_p6 }
  0x2d   : > { %601 = shalt.err (!%p598_p9)
}
  0x2e   : > { %s602_s0 = scalar_lea.vmem %s127_s11, 512  ;;  %p610_p11 = scmp.lt.s32.totalorder %s127_s11, %s127_s11 }
  0x2f   : > { %p603_p10 = scmp.ne.s32.totalorder %s127_s11, %s602_s0  ;;  %p611_p7 = scmp.lt.s32.totalorder %s602_s0, %s602_s0 }
  0x31   : > { %p605_p12 = pnand %p603_p10, %p591_p4  ;;  %p612_p0 = por %p611_p7, %p610_p11 }
  0x33   : > { %p606_p1 = pneg %p605_p12 }
  0x35   : > { %p613_p13 = pnand %p612_p0, %p606_p1 }
  0x37   : > { %616 = shalt.err (!%p613_p13)
}
  0x38   : > { %s738_s28 = smov 128   ;;  %s739_s30 = smov 8  }
  0x39   : > { %513 = dma.hbm_to_vmem [thread:$0]  (!%p840_p2), %s992_s1, 512, %s127_s11, [#allocation5], %s738_s28, %s738_s28, %s739_s30  }
  0x3a   : > { %s617_s16 = scalar_lea.hbm %s993_s2, 128 }
  0x3b   : > { %p618_p3 = scmp.ne.s32.totalorder %s993_s2, %s617_s16  ;;  %p624_p13 = scmp.lt.u32.totalorder %s617_s16, %s993_s2 }
  0x3d   : > { %p620_p7 = pnand %p618_p3, %p591_p4 }
  0x3f   : > { %p621_p11 = pneg %p620_p7 }
  0x41   : > { %p626_p0 = pnand %p624_p13, %p621_p11 }
  0x43   : > { %629 = shalt.err (!%p626_p0)
}
  0x44   : > { %s630_s11 = scalar_lea.vmem %s844_s14, 128  ;;  %p638_p9 = scmp.lt.s32.totalorder %s844_s14, %s844_s14 }
  0x45   : > { %p631_p5 = scmp.ne.s32.totalorder %s844_s14, %s630_s11  ;;  %p639_p10 = scmp.lt.s32.totalorder %s630_s11, %s630_s11 }
  0x47   : > { %p633_p6 = pnand %p631_p5, %p591_p4  ;;  %p640_p12 = por %p639_p10, %p638_p9 }
  0x49   : > { %p634_p8 = pneg %p633_p6 }
  0x4b   : > { %p641_p1 = pnand %p640_p12, %p634_p8 }
  0x4d   : > { %644 = shalt.err (!%p641_p1)
}
  0x4e   : > { %516 = dma.hbm_to_vmem [thread:$0]  (!%p840_p2), %s993_s2, 128, %s844_s14, [#allocation8]  }
  0x4f   : > { %p1004_p3 = scmp.ne.s32.totalorder %s1001_s8, 0 }
  0x50   : > { %p1005_p7 = scmp.ne.s32.totalorder (!%p1004_p3), %s1002_s9, 0 }
  0x51   : > { %155 = sbr.rel (%p1004_p3) target bundleno = 147 (0x93), region = 28 }
  0x58   : > { %700 = dma.done.wait (%p1005_p7), [#allocation5], 512  }
  0x59   : > { %702 = vsyncadd (%p1005_p7), [#allocation5], 4294966784 }
  0x5a   : > { %704 = dma.done.wait (%p1005_p7), [#allocation8], 128  }
  0x5b   : > { %706 = vsyncadd (%p1005_p7), [#allocation8], 4294967168  ;;  %s173_s12 = sand.u32 1, %s717_s23   ;;  %s905_s14 = sshll.u32 %s725_s25, 7  ;;  %v191_v0 = vld [vmem:[#allocation7] sm:$0x1] }
  0x5c   : > { %s184_s8 = sld [smem:[#allocation3 + %s905_s14]]  ;;  %s431_s28 = sshll.u32 %s173_s12, 3  ;;  %v209_v3 = vld [vmem:[#allocation7 + $0x1] sm:$0x1]  ;;  %v227_v6 = vld [vmem:[#allocation7 + $0x2] sm:$0x1] }
  0x5d   : > { %s201_s30 = sadd.s32 1, %s905_s14  ;;  %s219_s5 = sadd.s32 2, %s905_s14  ;;  %v245_v9 = vld [vmem:[#allocation7 + $0x3] sm:$0x1]  ;;  %v263_v12 = vld [vmem:[#allocation7 + $0x4] sm:$0x1] }
  0x5e   : > { %s202_s10 = sld [smem:[#allocation3 + %s201_s30]]  ;;  %s237_s9 = sadd.s32 3, %s905_s14  ;;  %v281_v15 = vld [vmem:[#allocation7 + $0x5] sm:$0x1]  ;;  %v299_v16 = vld [vmem:[#allocation7 + $0x6] sm:$0x1] }
  0x5f   : > { %s220_s13 = sld [smem:[#allocation3 + %s219_s5]]  ;;  %s255_s15 = sadd.s32 4, %s905_s14  ;;  %v317_v21 = vld [vmem:[#allocation7 + $0x7] sm:$0x1] }
  0x60   : > { %s914_s16 = sld [smem:[#allocation3 + %s237_s9]]  ;;  %s918_s19 = scalar_lea.vmem [#allocation9], %s431_s28 }
  0x61   : > { %s916_s25 = sld [smem:[#allocation3 + %s255_s15]]  ;;  %s291_s28 = sadd.s32 6, %s905_s14 }
  0x62   : > { %p185_p2 = scmp.gt.s32.totalorder %s184_s8, 0  ;;  %p433_p4 = scmp.lt.s32.totalorder %s184_s8, 31 }
  0x63   : > { %s292_s5 = sld [smem:[#allocation3 + %s291_s28]] }
  0x64   : > { %s1016_s8 = smov (!%p185_p2, %s184_s8), 0  ;;  %p203_p11 = scmp.gt.s32.totalorder %s202_s10, 0 }
  0x65   : > { %p439_p13 = scmp.lt.s32.totalorder %s202_s10, 31  ;;  %s1018_s8 = smov (!%p433_p4, %s1016_s8), 31 }
  0x66   : > { %s1020_s10 = smov (!%p203_p11, %s202_s10), 0  ;;  %p221_p0 = scmp.gt.s32.totalorder %s220_s13, 0 }
  0x67   : > { %s189_s17 = scalar_lea.vmem [#allocation4], %s1018_s8  ;;  %s1022_s10 = smov (!%p439_p13, %s1020_s10), 31 }
  0x68   : > { %v190_v1 = vld [vmem:[%s189_s17] sm:$0x1]  ;;  %s222_s18 = scalar_select %p221_p0, %s220_s13, 0 }
  0x69   : > { %v192_v2 = vadd.f32 %v191_v0, %v190_v1  ;;  %p445_p5 = scmp.lt.s32.totalorder %s220_s13, 31  ;;  %s207_s20 = scalar_lea.vmem [#allocation4], %s1022_s10 }
  0x6a   : > { %v208_v4 = vld [vmem:[%s207_s20] sm:$0x1]  ;;  %p239_p6 = scmp.gt.s32.totalorder %s914_s16, 0  ;;  %p451_p8 = scmp.lt.s32.totalorder %s914_s16, 31 }
  0x6b   : > { %193 = vst [vmem:[%s918_s19] sm:$0x1] %v192_v2  ;;  %v210_v5 = vadd.f32 %v209_v3, %v208_v4  ;;  %s1024_s18 = smov (!%p445_p5, %s222_s18), 31  ;;  %p257_p9 = scmp.gt.s32.totalorder %s916_s25, 0 }
  0x6c   : > { %s1026_s16 = smov (!%p239_p6, %s914_s16), 0  ;;  %s225_s11 = scalar_lea.vmem [#allocation4], %s1024_s18 }
  0x6d   : > { %211 = vst [vmem:[%s918_s19 + $0x1] sm:$0x1] %v210_v5  ;;  %v226_v7 = vld [vmem:[%s225_s11] sm:$0x1]  ;;  %s1028_s16 = smov (!%p451_p8, %s1026_s16), 31  ;;  %p457_p10 = scmp.lt.s32.totalorder %s916_s25, 31 }
  0x6e   : > { %v228_v8 = vadd.f32 %v227_v6, %v226_v7  ;;  %s258_s21 = scalar_select %p257_p9, %s916_s25, 0 }
  0x6f   : > { %s243_s0 = scalar_lea.vmem [#allocation4], %s1028_s16  ;;  %s273_s8 = sadd.s32 5, %s905_s14 }
  0x70   : > { %229 = vst [vmem:[%s918_s19 + $0x2] sm:$0x1] %v228_v8  ;;  %v244_v10 = vld [vmem:[%s243_s0] sm:$0x1]  ;;  %s1030_s21 = smov (!%p457_p10, %s258_s21), 31  ;;  %s274_s30 = sld [smem:[#allocation3 + %s273_s8]] }
  0x71   : > { %v246_v11 = vadd.f32 %v245_v9, %v244_v10  ;;  %s309_s10 = sadd.s32 7, %s905_s14  ;;  %s261_s13 = scalar_lea.vmem [#allocation4], %s1030_s21 }
  0x72   : > { %v262_v13 = vld [vmem:[%s261_s13] sm:$0x1]  ;;  %s310_s9 = sld [smem:[#allocation3 + %s309_s10]]  ;;  %p293_p3 = scmp.gt.s32.totalorder %s292_s5, 0 }
  0x73   : > { %247 = vst [vmem:[%s918_s19 + $0x3] sm:$0x1] %v246_v11  ;;  %v264_v14 = vadd.f32 %v263_v12, %v262_v13  ;;  %p469_p7 = scmp.lt.s32.totalorder %s292_s5, 31  ;;  %s335_s25 = sshll.u32 %s918_s19, 4  ;;  %s943_s25 = int_to_ptr.vmem [resolvable:$true] %s335_s25 }
  0x74   : > { %s1034_s5 = smov (!%p293_p3, %s292_s5), 0  ;;  %s941_s11 = scalar_lea.hbm %s994_s3, %s905_s14 }
  0x75   : > { %265 = vst [vmem:[%s918_s19 + $0x4] sm:$0x1] %v264_v14  ;;  %s1038_s5 = smov (!%p469_p7, %s1034_s5), 31  ;;  %s321_s21 = scalar_lea.sflag [#allocation6], %s173_s12 }
  0x76   : > { %p275_p12 = scmp.gt.s32.totalorder %s274_s30, 0  ;;  %p463_p1 = scmp.lt.s32.totalorder %s274_s30, 31 }
  0x77   : > { %s297_s16 = scalar_lea.vmem [#allocation4], %s1038_s5  ;;  %s645_s0 = scalar_lea.vmem %s943_s25, 128 }
  0x78   : > { %s1032_s30 = smov (!%p275_p12, %s274_s30), 0  ;;  %p311_p2 = scmp.gt.s32.totalorder %s310_s9, 0  ;;  %v298_v19 = vld [vmem:[%s297_s16] sm:$0x1] }
  0x79   : > { %s1036_s30 = smov (!%p463_p1, %s1032_s30), 31  ;;  %p475_p4 = scmp.lt.s32.totalorder %s310_s9, 31  ;;  %v300_v20 = vadd.f32 %v299_v16, %v298_v19 }
  0x7a   : > { %s279_s15 = scalar_lea.vmem [#allocation4], %s1036_s30  ;;  %s1040_s9 = smov (!%p311_p2, %s310_s9), 0 }
  0x7b   : > { %v280_v17 = vld [vmem:[%s279_s15] sm:$0x1]  ;;  %s1042_s9 = smov (!%p475_p4, %s1040_s9), 31  ;;  %301 = vst [vmem:[%s918_s19 + $0x6] sm:$0x1] %v300_v20  ;;  %p646_p11 = scmp.ne.s32.totalorder %s943_s25, %s645_s0 }
  0x7c   : > { %v282_v18 = vadd.f32 %v281_v15, %v280_v17  ;;  %s315_s17 = scalar_lea.vmem [#allocation4], %s1042_s9  ;;  %p1006_p13 = scmp.ne.s32.totalorder %s999_s4, 0 }
  0x7d   : > { %v316_v22 = vld [vmem:[%s315_s17] sm:$0x1]  ;;  %s740_s8 = smov [#allocation9]  }
  0x7e   : > { %283 = vst [vmem:[%s918_s19 + $0x5] sm:$0x1] %v282_v18  ;;  %v318_v23 = vadd.f32 %v317_v21, %v316_v22  ;;  %p647_p0 = pnand %p646_p11, %p1006_p13  ;;  %s649_s28 = sshll.u32 %s740_s8, 4  ;;  %s650_s28 = int_to_ptr.vmem [resolvable:$false] %s649_s28 }
  0x7f   : > { %s651_s30 = scalar_lea.vmem %s650_s28, 256  ;;  %p652_p6 = scmp.lt.s32.totalorder %s943_s25, %s650_s28 }
  0x80   : > { %319 = vst [vmem:[%s918_s19 + $0x7] sm:$0x1] %v318_v23  ;;  %p648_p5 = pneg %p647_p0  ;;  %p653_p8 = scmp.lt.s32.totalorder %s651_s30, %s645_s0 }
  0x82   : > { %p654_p9 = por %p653_p8, %p652_p6 }
  0x84   : > { %p655_p10 = pnand %p654_p9, %p648_p5 }
  0x86   : > { %658 = shalt.err (!%p655_p10)
}
  0x87   : > { %s659_s12 = scalar_lea.hbm %s941_s11, 128  ;;  %s663_s5 = scalar_lea.hbm %s994_s3, 256 }
  0x88   : > { %p660_p12 = scmp.ne.s32.totalorder %s941_s11, %s659_s12  ;;  %p664_p7 = scmp.lt.u32.totalorder %s941_s11, %s994_s3 }
  0x89   : > { %p665_p2 = scmp.lt.u32.totalorder %s663_s5, %s659_s12  ;;  %p667_p11 = scmp.lt.u32.totalorder %s659_s12, %s941_s11 }
  0x8a   : > { %p661_p1 = pnand %p660_p12, %p1006_p13 }
  0x8b   : > { %p666_p4 = por %p665_p2, %p664_p7 }
  0x8c   : > { %p662_p3 = pneg %p661_p1 }
  0x8d   : > { %p668_p0 = por %p667_p11, %p666_p4 }
  0x8f   : > { %p669_p5 = pnand %p668_p0, %p662_p3 }
  0x91   : > { %672 = shalt.err (!%p669_p5)
}
  0x92   : > { %508 = dma.vmem_to_hbm [thread:$0]  (%p1006_p13), %s943_s25, 128, %s941_s11, %s321_s21  }
  0x93 PF: > { %p525_p6 = scmp.ge.s32.totalorder %s733_s27, 2  ;;  %s347_s9 = sand.u32 1, %s713_s22  }
  0x94   : > { %p1007_p8 = scmp.ne.s32.totalorder %s1000_s6, 0  ;;  %s348_s15 = scalar_lea.sflag [#allocation6], %s347_s9 }
  0x96   : > { %p518_p9 = pnand %p525_p6, %p1007_p8 }
  0x98   : > { %708 = dma.done.wait (!%p518_p9), %s348_s15, 128  }
  0x99   : > { %710 = vsyncadd (!%p518_p9), %s348_s15, 4294967168  ;;  %s22_s27 = sadd.s32 1, %s733_s27   ;;  %s1008_s22 = smov %s717_s23 }
  0x9a   : > { %p19_p10 = scmp.ge.s32.totalorder %s22_s27, 4   ;;  %s1009_s23 = smov %s721_s24 }
  0x9b   : > { %s1010_s24 = smov %s826_s7  ;;  %s1011_s25 = smov %s729_s26 }
  0x9c   : > { %s1012_s26 = smov %s1014_s29  ;;  %21 = sbr.rel (!%p19_p10) target bundleno = 18 (0x12), region = 78 }
  0xa3   :  { %353 = vsyncpa [#allocation5], 1 }
  0xa4   :  { %355 = vsyncpa [#allocation5 + $0x1], 1 }
  0xa5   :  { %356 = vsyncpa [#allocation8], 1 }
  0xa6   :  { %357 = vsyncpa [#allocation6], 1 }
  0xa7   :  { %359 = vsyncpa [#allocation6 + $0x1], 1 }

</bundles_post_ra>
